<compile_context>
chip_gen: v7x
topology: tpu7x:2x2x1
jax: 0.10.0
libtpu: 0.0.40
codegen_flags: <defaults>
</compile_context>

<pallas_src>
import functools

import jax
import jax.numpy as jnp
from jax import lax
from jax.experimental import pallas as pl
from jax.experimental.pallas import tpu as pltpu

# ---------------------------------------------------------------------------
# Small-model configuration (stand-ins for the full-size 2048/512 channels)
# ---------------------------------------------------------------------------
FEA_DIM = 32            # stands in for 2048 (layer4 output channels)
RED_DIM = FEA_DIM // 4  # PPM reduction dim (2048/len(bins))
MAIN_DIM = 32           # stands in for 512 (cls head output / proto dim)
CLASSES = 8
BASE_NUM = 6
BINS = (1, 2, 3, 6)
BN_EPS = 1e-5
LANE = 128


def _round_up(x, m):
    return ((x + m - 1) // m) * m


# ---------------------------------------------------------------------------
# Kernel 1: tiled matmul + (optional scale) + bias + (optional ReLU)
#           used for the backbone stand-in (and any plain 1x1 conv)
# ---------------------------------------------------------------------------
def _mm_affine_kernel(*refs, relu, has_scale):
    if has_scale:
        w_ref, x_ref, scale_ref, bias_ref, o_ref, acc_ref = refs
    else:
        w_ref, x_ref, bias_ref, o_ref, acc_ref = refs
        scale_ref = None

    @pl.when(pl.program_id(2) == 0)
    def _():
        acc_ref[...] = jnp.zeros_like(acc_ref)

    acc_ref[...] += jnp.dot(w_ref[...], x_ref[...],
                            preferred_element_type=jnp.float32)

    @pl.when(pl.program_id(2) == pl.num_programs(2) - 1)
    def _():
        y = acc_ref[...]
        if has_scale:                       # skipped entirely for identity scale
            y = y * scale_ref[...]
        y = y + bias_ref[...]
        if relu:
            y = jnp.maximum(y, 0.0)
        o_ref[...] = y


def mm_affine(w, x, bias, scale=None, relu=True, tm=128, tn=256, tk=512):
    """y = act(scale * (W @ X) + bias).  W:(M,K) bf16, X:(K,N) bf16, out f32.

    Tiles are clamped to the array dims; on v7x halve tn/tk if the per-tile
    footprint approaches the 48 MiB scoped-VMEM budget set below.
    """
    m, kdim = w.shape
    n = x.shape[1]
    tm, tn, tk = min(tm, m), min(tn, n), min(tk, kdim)
    assert m % tm == 0 and n % tn == 0 and kdim % tk == 0
    grid = (m // tm, n // tn, kdim // tk)

    in_specs = [pl.BlockSpec((tm, tk), lambda i, j, k: (i, k)),
                pl.BlockSpec((tk, tn), lambda i, j, k: (k, j))]
    args = [w, x]
    if scale is not None:
        in_specs.append(pl.BlockSpec((tm, 1), lambda i, j, k: (i, 0)))
        args.append(scale)
    in_specs.append(pl.BlockSpec((tm, 1), lambda i, j, k: (i, 0)))
    args.append(bias)

    kern = functools.partial(_mm_affine_kernel, relu=relu,
                             has_scale=scale is not None)
    return pl.pallas_call(
        kern,
        out_shape=jax.ShapeDtypeStruct((m, n), jnp.float32),
        grid=grid,
        in_specs=in_specs,
        out_specs=pl.BlockSpec((tm, tn), lambda i, j, k: (i, j)),
        scratch_shapes=[pltpu.VMEM((tm, tn), jnp.float32)],
        compiler_params=pltpu.CompilerParams(
            dimension_semantics=("parallel", "parallel", "arbitrary"),
            vmem_limit_bytes=48 * 1024 * 1024),
    )(*args)


# ---------------------------------------------------------------------------
# Kernel 2: PPM 1x1 conv + folded BN + ReLU, one grid step per bin
# ---------------------------------------------------------------------------
def _ppm_kernel(x_ref, w_ref, scale_ref, bias_ref, o_ref):
    y = jnp.dot(w_ref[0], x_ref[0], preferred_element_type=jnp.float32)
    y = y * scale_ref[0] + bias_ref[0]
    o_ref[0] = jnp.maximum(y, 0.0)


def ppm_branches(pooled_stack, w_stack, scale_stack, bias_stack):
    nb, fea, npad = pooled_stack.shape
    red = w_stack.shape[1]
    return pl.pallas_call(
        _ppm_kernel,
        out_shape=jax.ShapeDtypeStruct((nb, red, npad), jnp.float32),
        grid=(nb,),
        in_specs=[
            pl.BlockSpec((1, fea, npad), lambda i: (i, 0, 0)),
            pl.BlockSpec((1, red, fea), lambda i: (i, 0, 0)),
            pl.BlockSpec((1, red, 1), lambda i: (i, 0, 0)),
            pl.BlockSpec((1, red, 1), lambda i: (i, 0, 0)),
        ],
        out_specs=pl.BlockSpec((1, red, npad), lambda i: (i, 0, 0)),
        compiler_params=pltpu.CompilerParams(
            dimension_semantics=("parallel",)),
    )(pooled_stack, w_stack, scale_stack, bias_stack)


# ---------------------------------------------------------------------------
# Kernel 3: fused cls head
#   Conv3x3(no bias) + BN + ReLU + Dropout(eval=identity) + Conv1x1(bias)
#   3x3 conv = 9 accumulated matmuls over lane-shifted windows of the padded,
#   flattened feature map (no im2col materialization in HBM).
# ---------------------------------------------------------------------------
def _cls_head_kernel(x_ref, w3_ref, s3_ref, b3_ref, w1_ref, b1_ref, o_ref,
                     *, taps, lo):
    xv = x_ref[0]                                           # (Cin, Lp) bf16
    mid_c = w3_ref.shape[1]
    acc = jnp.zeros((mid_c, lo), jnp.float32)
    for t, off in enumerate(taps):                          # 9 static taps
        acc = acc + jnp.dot(w3_ref[t], xv[:, off:off + lo],
                            preferred_element_type=jnp.float32)
    mid = jnp.maximum(acc * s3_ref[...] + b3_ref[...], 0.0)  # BN + ReLU
    # Dropout2d(p=0.1) is the identity in eval mode.
    out = jnp.dot(w1_ref[...], mid.astype(w1_ref.dtype),
                  preferred_element_type=jnp.float32) + b1_ref[...]
    o_ref[0] = out


def cls_head(ppm_feat, params):
    b, c2, hf, wf = ppm_feat.shape
    stride = wf + 2
    # zero-pad spatially (padding=1), flatten (hf+2, wf+2) -> one lane axis,
    # pad lanes so every tap-shifted 128-wide window stays in bounds.
    xpad = jnp.pad(ppm_feat, ((0, 0), (0, 0), (1, 1), (1, 1)))
    xflat = xpad.reshape(b, c2, (hf + 2) * stride)
    lo = _round_up(hf * stride, LANE)             # lane-dense output width
    lp = _round_up(lo + 2 * stride + 2, LANE)
    xflat = jnp.pad(xflat, ((0, 0), (0, 0), (0, lp - xflat.shape[2])))
    xflat = xflat.astype(jnp.bfloat16)
    taps = tuple(di * stride + dj for di in range(3) for dj in range(3))

    out = pl.pallas_call(
        functools.partial(_cls_head_kernel, taps=taps, lo=lo),
        out_shape=jax.ShapeDtypeStruct((b, MAIN_DIM, lo), jnp.float32),
        grid=(b,),
        in_specs=[
            pl.BlockSpec((1, c2, lp), lambda i: (i, 0, 0)),
            pl.BlockSpec((9, MAIN_DIM, c2), lambda i: (0, 0, 0)),
            pl.BlockSpec((MAIN_DIM, 1), lambda i: (0, 0)),
            pl.BlockSpec((MAIN_DIM, 1), lambda i: (0, 0)),
            pl.BlockSpec((MAIN_DIM, MAIN_DIM), lambda i: (0, 0)),
            pl.BlockSpec((MAIN_DIM, 1), lambda i: (0, 0)),
        ],
        out_specs=pl.BlockSpec((1, MAIN_DIM, lo), lambda i: (i, 0, 0)),
        compiler_params=pltpu.CompilerParams(
            dimension_semantics=("parallel",),
            vmem_limit_bytes=48 * 1024 * 1024),
    )(xflat, params['cls_w3'], params['cls_scale3'], params['cls_bias3'],
      params['cls_w1'], params['cls_b1'])

    # discard the gutter columns of the flattened padded layout
    raw = out[:, :, :hf * stride].reshape(b, MAIN_DIM, hf, stride)[:, :, :, :wf]
    return raw


# ---------------------------------------------------------------------------
# Kernel 4: fused prediction stage (per batch element)
#   get_pred(main_proto) -> softmax over pixels -> pred @ x^T -> cosine-weight
#   blend (post_refine_proto_v2) -> add/replace with gened_proto ->
#   get_pred(refined 3-D proto).  x_flat is loaded once; only the final
#   (K, HW) logits leave the kernel.
# ---------------------------------------------------------------------------
def _predict_kernel(x_ref, proto_ref, gened_ref, o_ref, *, hw, base_num):
    x = x_ref[0]                                            # (C, HWp) f32
    k, c = proto_ref.shape
    hwp = x.shape[1]

    # normalize x over channels (1e-12 norm floor; also guards padded columns)
    xn = x * lax.rsqrt(jnp.maximum(jnp.sum(x * x, axis=0, keepdims=True), 1e-24))

    proto = proto_ref[...]                                  # (K, C)
    pn = proto * lax.rsqrt(
        jnp.maximum(jnp.sum(proto * proto, axis=1, keepdims=True), 1e-24))

    # first cosine classifier: pred = 10 * proto_n @ x_n
    pred1 = jnp.dot(pn, xn, preferred_element_type=jnp.float32) * 10.0

    # softmax over pixels (dim=2 in the PyTorch reference); padded columns masked
    col = lax.broadcasted_iota(jnp.int32, (k, hwp), 1)
    valid = col < hw
    pred1 = jnp.where(valid, pred1, -1e30)
    m = jnp.max(pred1, axis=1, keepdims=True)
    e = jnp.where(valid, jnp.exp(pred1 - m), 0.0)
    sm = e * pl.reciprocal(jnp.sum(e, axis=1, keepdims=True), approx=True)

    # pred_proto = softmax(pred) @ x^T  -> (K, C)
    pred_proto = lax.dot_general(sm, x, (((1,), (1,)), ((), ())),
                                 preferred_element_type=jnp.float32)
    ppn = pred_proto * lax.rsqrt(
        jnp.maximum(jnp.sum(pred_proto * pred_proto, axis=1, keepdims=True), 1e-24))
    w = jnp.sum(ppn * pn, axis=1, keepdims=True)
    w = jnp.maximum(w, 0.0)                                 # w * (w > 0)
    refine = w * pred_proto + (1.0 - w) * proto             # (K, C)

    # blend with gened_proto: base rows add, novel rows replace
    gened = gened_ref[...]
    row = lax.broadcasted_iota(jnp.int32, (k, c), 0)
    refine = jnp.where(row < base_num, refine + gened, gened)

    # second cosine classifier with the per-batch refined (3-D) prototypes
    rn = refine * lax.rsqrt(
        jnp.maximum(jnp.sum(refine * refine, axis=1, keepdims=True), 1e-24))
    o_ref[0] = jnp.dot(rn, xn, preferred_element_type=jnp.float32) * 10.0


def fused_predict(x_flat, main_proto, gened_proto, hw, base_num):
    b, c, hwp = x_flat.shape
    k = main_proto.shape[0]
    return pl.pallas_call(
        functools.partial(_predict_kernel, hw=hw, base_num=base_num),
        out_shape=jax.ShapeDtypeStruct((b, k, hwp), jnp.float32),
        grid=(b,),
        in_specs=[
            pl.BlockSpec((1, c, hwp), lambda i: (i, 0, 0)),
            pl.BlockSpec((k, c), lambda i: (0, 0)),
            pl.BlockSpec((k, c), lambda i: (0, 0)),
        ],
        out_specs=pl.BlockSpec((1, k, hwp), lambda i: (i, 0, 0)),
        compiler_params=pltpu.CompilerParams(
            dimension_semantics=("parallel",)),
    )(x_flat, main_proto, gened_proto)


# ---------------------------------------------------------------------------
# JAX glue (adaptive pooling / bilinear resize matrices, layout shuffles)
# ---------------------------------------------------------------------------
def _adaptive_pool_matrix(size, nbins):
    i = jnp.arange(nbins)
    starts = (i * size) // nbins
    ends = ((i + 1) * size + nbins - 1) // nbins
    idx = jnp.arange(size)[None, :]
    mask = ((idx >= starts[:, None]) & (idx < ends[:, None])).astype(jnp.float32)
    return mask / jnp.sum(mask, axis=1, keepdims=True)


def adaptive_avg_pool(x, nbin):
    _, _, h, w = x.shape
    return jnp.einsum('ph,bchw,qw->bcpq',
                      _adaptive_pool_matrix(h, nbin), x,
                      _adaptive_pool_matrix(w, nbin))


def _bilinear_matrix(n_in, n_out):
    if n_out == 1:
        return jnp.zeros((1, n_in), jnp.float32).at[0, 0].set(1.0)
    if n_in == 1:
        return jnp.ones((n_out, 1), jnp.float32)
    pos = jnp.arange(n_out, dtype=jnp.float32) * (n_in - 1) / (n_out - 1)
    lo = jnp.clip(jnp.floor(pos).astype(jnp.int32), 0, n_in - 2)
    frac = pos - lo.astype(jnp.float32)
    rows = jnp.arange(n_out)
    m = jnp.zeros((n_out, n_in), jnp.float32)
    m = m.at[rows, lo].add(1.0 - frac)
    m = m.at[rows, lo + 1].add(frac)
    return m


def bilinear_resize(x, h_out, w_out):
    """F.interpolate(..., mode='bilinear', align_corners=True)."""
    _, _, h, w = x.shape
    return jnp.einsum('ph,bchw,qw->bcpq',
                      _bilinear_matrix(h, h_out), x, _bilinear_matrix(w, w_out))


def _nchw_to_mat(x):
    b, c, h, w = x.shape
    return x.transpose(1, 0, 2, 3).reshape(c, b * h * w)


def _mat_to_nchw(y, b, h, w):
    cout = y.shape[0]
    return y.reshape(cout, b, h, w).transpose(1, 0, 2, 3)


# ---------------------------------------------------------------------------
# Parameters (deterministic init; BatchNorm folded with default eval stats)
# ---------------------------------------------------------------------------
def init_params(key):
    keys = jax.random.split(key, 16)
    bn_scale = 1.0 / jnp.sqrt(1.0 + BN_EPS)   # gamma=1, mean=0, var=1, beta=0
    nb = len(BINS)
    params = {
        # backbone stand-in (1x1 stride-8 conv + ReLU)
        'bb_w': (0.1 * jax.random.normal(keys[0], (FEA_DIM, 3))).astype(jnp.bfloat16),
        'bb_b': jnp.zeros((FEA_DIM, 1), jnp.float32),
        # PPM: per-bin 1x1 conv (no bias) + BN + ReLU
        'ppm_w': (0.1 * jax.random.normal(keys[1], (nb, RED_DIM, FEA_DIM))
                  ).astype(jnp.bfloat16),
        'ppm_scale': jnp.full((nb, RED_DIM, 1), bn_scale, jnp.float32),
        'ppm_bias': jnp.zeros((nb, RED_DIM, 1), jnp.float32),
        # cls head: 3x3 conv (9 taps) + BN + ReLU, then 1x1 conv with bias
        'cls_w3': (0.05 * jax.random.normal(keys[2], (9, MAIN_DIM, 2 * FEA_DIM))
                   ).astype(jnp.bfloat16),
        'cls_scale3': jnp.full((MAIN_DIM, 1), bn_scale, jnp.float32),
        'cls_bias3': jnp.zeros((MAIN_DIM, 1), jnp.float32),
        'cls_w1': (0.1 * jax.random.normal(keys[3], (MAIN_DIM, MAIN_DIM))
                   ).astype(jnp.bfloat16),
        'cls_b1': 0.01 * jax.random.normal(keys[4], (MAIN_DIM, 1), jnp.float32),
        # prototypes
        'main_proto': jax.random.normal(keys[5], (CLASSES, MAIN_DIM), jnp.float32),
    }
    return params


# ---------------------------------------------------------------------------
# Eval-mode forward pass (eval_model=True path of PSPNet_multitask_coco)
# ---------------------------------------------------------------------------
def pspnet_eval_forward(params, x, gened_proto, base_num=BASE_NUM, zoom_factor=8):
    b, _, hin, win = x.shape
    assert (hin - 1) % 8 == 0 and (win - 1) % 8 == 0
    h_out = int((hin - 1) / 8 * zoom_factor + 1)
    w_out = int((win - 1) / 8 * zoom_factor + 1)

    # ---- backbone stand-in (stride-8, FEA_DIM channels) --------------------
    # TODO(synk): replaces the pretrained dilated ResNet-50 (layer0..layer4).
    xs = x[:, :, ::8, ::8]
    _, _, hf, wf = xs.shape
    n = b * hf * wf
    npad = _round_up(n, LANE)
    xmat = jnp.pad(_nchw_to_mat(xs), ((0, 0), (0, npad - n))).astype(jnp.bfloat16)
    feat = mm_affine(params['bb_w'], xmat, params['bb_b'], scale=None, relu=True)
    feat = _mat_to_nchw(feat[:, :n], b, hf, wf)            # (B, FEA_DIM, hf, wf)

    # ---- PPM ---------------------------------------------------------------
    np_ppm = _round_up(b * max(BINS) ** 2, LANE)
    pooled_list = []
    for nbin in BINS:
        pm = _nchw_to_mat(adaptive_avg_pool(feat, nbin))   # (FEA, B*bin*bin)
        pooled_list.append(jnp.pad(pm, ((0, 0), (0, np_ppm - pm.shape[1]))))
    pooled_stack = jnp.stack(pooled_list, 0).astype(jnp.bfloat16)
    ppm_y = ppm_branches(pooled_stack, params['ppm_w'],
                         params['ppm_scale'], params['ppm_bias'])
    ppm_outs = [feat]
    for i, nbin in enumerate(BINS):
        y = _mat_to_nchw(ppm_y[i, :, :b * nbin * nbin], b, nbin, nbin)
        ppm_outs.append(bilinear_resize(y, hf, wf))        # align_corners=True
    ppm_feat = jnp.concatenate(ppm_outs, axis=1)           # (B, 2*FEA_DIM, hf, wf)

    # ---- fused cls head (3x3 conv + BN + ReLU + 1x1 conv + bias) -----------
    raw_x = cls_head(ppm_feat, params)                     # (B, MAIN_DIM, hf, wf)

    # ---- eval_model branch: fused get_pred / post_refine / get_pred --------
    if gened_proto.ndim == 3:
        gened_proto = gened_proto[0]
    hw = hf * wf
    hwp = _round_up(hw, LANE)
    x_flat = jnp.pad(raw_x.reshape(b, MAIN_DIM, hw),
                     ((0, 0), (0, 0), (0, hwp - hw)))
    pred = fused_predict(x_flat, params['main_proto'],
                         gened_proto.astype(jnp.float32), hw, base_num)
    pred = pred[:, :, :hw].reshape(b, CLASSES, hf, wf)

    return bilinear_resize(pred, h_out, w_out)             # align_corners=True


# ---------------------------------------------------------------------------
if __name__ == "__main__":
    key = jax.random.PRNGKey(0)
    kp, kx, kg = jax.random.split(key, 3)

    params = init_params(kp)

    # input must satisfy (H-1) % 8 == 0
    x = jax.random.normal(kx, (2, 3, 33, 33), jnp.float32)

    gened_proto = jax.random.normal(kg, (CLASSES, MAIN_DIM), jnp.float32)
    gened_proto = gened_proto / (jnp.linalg.norm(gened_proto, axis=1, keepdims=True) + 1e-12)

    out = pspnet_eval_forward(params, x, gened_proto, base_num=BASE_NUM)
    out = jax.block_until_ready(out)

    assert out.shape == (2, CLASSES, 33, 33), out.shape
    assert bool(jnp.all(jnp.isfinite(out)))
    print("KERNEL_OK")
</pallas_src>

<mosaic_0001>
module attributes {stable_mosaic.version = 11 : i64} {
  func.func @_mm_affine_kernel(%arg0: i32, %arg1: i32, %arg2: i32, %arg3: memref<32x3xbf16, #tpu.memory_space<vmem>>, %arg4: memref<3x128xbf16, #tpu.memory_space<vmem>>, %arg5: memref<32x1xf32, #tpu.memory_space<vmem>>, %arg6: memref<32x128xf32, #tpu.memory_space<vmem>>, %arg7: memref<32x128xf32, #tpu.memory_space<vmem>>) attributes {dimension_semantics = [#tpu.dimension_semantics<parallel>, #tpu.dimension_semantics<parallel>, #tpu.dimension_semantics<arbitrary>], iteration_bounds = array<i64: 1, 1, 1>, scalar_prefetch = 0 : i64, scratch_operands = 1 : i64, tpu.core_type = #tpu.core_type<tc>, window_params = [{transform_indices = @transform_0, window_bounds = array<i64: 32, 3>}, {transform_indices = @transform_1, window_bounds = array<i64: 3, 128>}, {transform_indices = @transform_2, window_bounds = array<i64: 32, 1>}, {transform_indices = @transform_3, window_bounds = array<i64: 32, 128>}]} {
    %c0_i32 = arith.constant 0 : i32
    %0 = arith.cmpi eq, %arg2, %c0_i32 : i32
    %1 = arith.extui %0 : i1 to i32
    %c0_i32_0 = arith.constant 0 : i32
    %2 = arith.cmpi ne, %1, %c0_i32_0 : i32
    scf.if %2 {
      %cst_10 = arith.constant 0.000000e+00 : f32
      %12 = vector.broadcast %cst_10 : f32 to vector<32x128xf32>
      %c0_11 = arith.constant 0 : index
      %c0_12 = arith.constant 0 : index
      %13 = vector.load %arg7[%c0_11, %c0_12] : memref<32x128xf32, #tpu.memory_space<vmem>>, vector<32x128xf32>
      tpu.vector_store %arg7[%c0_11, %c0_12], %12 {strides = array<i32>} : memref<32x128xf32, #tpu.memory_space<vmem>>, vector<32x128xf32>,
    } else {
    }
    %c0 = arith.constant 0 : index
    %c0_1 = arith.constant 0 : index
    %3 = vector.load %arg7[%c0, %c0_1] : memref<32x128xf32, #tpu.memory_space<vmem>>, vector<32x128xf32>
    %c0_2 = arith.constant 0 : index
    %c0_3 = arith.constant 0 : index
    %4 = vector.load %arg3[%c0_2, %c0_3] : memref<32x3xbf16, #tpu.memory_space<vmem>>, vector<32x3xbf16>
    %c0_4 = arith.constant 0 : index
    %c0_5 = arith.constant 0 : index
    %5 = vector.load %arg4[%c0_4, %c0_5] : memref<3x128xbf16, #tpu.memory_space<vmem>>, vector<3x128xbf16>
    %cst = arith.constant dense<0.000000e+00> : vector<32x128xf32>
    %6 = tpu.matmul %4, %5, %cst {dimension_numbers = #tpu.dot_dimension_numbers<[1], [0], [0], [1], [0, 0, 1, 1], [], []>} : vector<32x3xbf16>, vector<3x128xbf16>, vector<32x128xf32> -> vector<32x128xf32>
    %7 = arith.addf %3, %6 : vector<32x128xf32>
    %c0_6 = arith.constant 0 : index
    %c0_7 = arith.constant 0 : index
    %8 = vector.load %arg7[%c0_6, %c0_7] : memref<32x128xf32, #tpu.memory_space<vmem>>, vector<32x128xf32>
    tpu.vector_store %arg7[%c0_6, %c0_7], %7 {strides = array<i32>} : memref<32x128xf32, #tpu.memory_space<vmem>>, vector<32x128xf32>,
    %c0_i32_8 = arith.constant 0 : i32
    %9 = arith.cmpi eq, %arg2, %c0_i32_8 : i32
    %10 = arith.extui %9 : i1 to i32
    %c0_i32_9 = arith.constant 0 : i32
    %11 = arith.cmpi ne, %10, %c0_i32_9 : i32
    scf.if %11 {
      %c0_10 = arith.constant 0 : index
      %c0_11 = arith.constant 0 : index
      %12 = vector.load %arg7[%c0_10, %c0_11] : memref<32x128xf32, #tpu.memory_space<vmem>>, vector<32x128xf32>
      %c0_12 = arith.constant 0 : index
      %c0_13 = arith.constant 0 : index
      %13 = vector.load %arg5[%c0_12, %c0_13] : memref<32x1xf32, #tpu.memory_space<vmem>>, vector<32x1xf32>
      %14 = vector.broadcast %13 : vector<32x1xf32> to vector<32x128xf32>
      %15 = arith.addf %12, %14 : vector<32x128xf32>
      %cst_14 = arith.constant 0.000000e+00 : f32
      %16 = vector.broadcast %cst_14 : f32 to vector<32x128xf32>
      %17 = arith.maximumf %15, %16 : vector<32x128xf32>
      %c0_15 = arith.constant 0 : index
      %c0_16 = arith.constant 0 : index
      %18 = vector.load %arg6[%c0_15, %c0_16] : memref<32x128xf32, #tpu.memory_space<vmem>>, vector<32x128xf32>
      tpu.vector_store %arg6[%c0_15, %c0_16], %17 {strides = array<i32>} : memref<32x128xf32, #tpu.memory_space<vmem>>, vector<32x128xf32>,
    } else {
    }
    return
  }
  func.func @transform_0(%arg0: i32, %arg1: i32, %arg2: i32) -> (i32, i32) {
    %c0_i32 = arith.constant 0 : i32
    return %arg0, %arg2 : i32, i32
  }
  func.func @transform_1(%arg0: i32, %arg1: i32, %arg2: i32) -> (i32, i32) {
    %c0_i32 = arith.constant 0 : i32
    return %arg2, %arg1 : i32, i32
  }
  func.func @transform_2(%arg0: i32, %arg1: i32, %arg2: i32) -> (i32, i32) {
    %c0_i32 = arith.constant 0 : i32
    %c0_i32_0 = arith.constant 0 : i32
    return %arg0, %c0_i32 : i32, i32
  }
  func.func @transform_3(%arg0: i32, %arg1: i32, %arg2: i32) -> (i32, i32) {
    %c0_i32 = arith.constant 0 : i32
    return %arg0, %arg1 : i32, i32
  }
}

</mosaic_0001>

<bundles_post_ra>
// kernel: tpu_custom_call.1
= control target key start
LH: loop header
LB: loop body
LE: loop exit
PB: predicated region body
PF: predicated region fallthrough
CT: control target
= control target key end

     0   :  { %vm50_vm0 = vcmask 1040384   ;;  %vm51_vm1 = vcmask 1041408   ;;  %v219_v2 = vmov 65535   ;;  %vm43_vm2 = vcmask 23552   ;;  %s279_s0 = inlined_call_operand.vmem [shape: bf16[32,3], index: 0, kind: input, shape index: {}]   ;;  %s280_s1 = inlined_call_operand.vmem [shape: bf16[3,128], index: 1, kind: input, shape index: {}]   ;;  %s281_s2 = inlined_call_operand.vmem [shape: f32[32,1], index: 2, kind: input, shape index: {}]   ;;  %s282_s3 = inlined_call_operand.hbm [shape: f32[32,128], index: 3, kind: output, shape index: {}]  }
   0x1   :  { %v32_v0 = vld [vmem:[%s280_s1] sm:$0x3]  ;;  %v52_v3 = vsel %vm50_vm0, 4294967295, %v219_v2  ;;  %v123_v6 = vld [vmem:[%s281_s2 + $0x10] sm:$0xff]  ;;  %v220_v8 = vmov 0  }
   0x2   :  { %v193_v1 = vld [vmem:[%s279_s0] sm:$0xff]   ;;  %v53_v4 = vsel %vm51_vm1, %v52_v3, 0  ;;  %192 = vset.pattern.permute.xlu1 %v220_v8  ;;  %191 = vset.pattern.permute.xlu0 %v220_v8 }
   0x3   :  { %182 = vmatprep.mubr.msk.bf16.mxu0 %vm43_vm2, %v193_v1  ;;  %v55_v5 = vand.u32 %v53_v4, %v32_v0  ;;  %v121_v7 = vld [vmem:[%s281_s2] sm:$0xff] }
   0x4   :  { %8 = vsyncpa [#allocation4], 0  ;;  %v194_v9 = vld [vmem:[%s279_s0 + $0x8] sm:$0xff]   ;;  %137 = vperm.xlu1 %192, %v123_v6   ;;  %127 = vperm.xlu0 %191, %v121_v7   ;;  %v124_v10 = vld [vmem:[%s281_s2 + $0x18] sm:$0xff]  ;;  %s221_s0 = smov [#allocation3]  }
   0x5   :  { %180 = vmatprep.subr.bf16.mxu0 %v55_v5  ;;  %v122_v11 = vld [vmem:[%s281_s2 + $0x8] sm:$0xff]  ;;  %s162_s25 = sshll.u32 %s221_s0, 4  ;;  %s163_s25 = int_to_ptr.vmem [resolvable:$true] %s162_s25 }
   0x6   :  { %181 = vmatpush3.bf16.msra.mxu0 %v55_v5  ;;  %s195_s2 = scalar_lea.vmem %s163_s25, 512  ;;  %p200_p1 = scmp.lt.s32.totalorder %s163_s25, %s163_s25 }
   0x7   :  { %p196_p0 = scmp.ne.s32.totalorder %s163_s25, %s195_s2  ;;  %p201_p2 = scmp.lt.s32.totalorder %s195_s2, %s195_s2 }
   0x8   :  { %142 = vperm.xlu1 %192, %v124_v10   ;;  %132 = vperm.xlu0 %191, %v122_v11  }
   0x9   :  { %183 = vmatmul.mubr.msk.bf16.vlgmr.msra.gmra.mrb[0].mxu0 %vm43_vm2, %v194_v9  ;;  %p202_p3 = por %p201_p2, %p200_p1 }
   0xb   :  { %p203_p4 = pnand %p202_p3, %p196_p0 }
  0x83   :  { %v138_v12 = vpop.permute.xlu1 %137  ;;  %v128_v13 = vpop.permute.xlu0 %127 }
  0x87   :  { %v143_v17 = vpop.permute.xlu1 %142  ;;  %v133_v20 = vpop.permute.xlu0 %132 }
  0xdc   :  { %v184_v14 = vpop.f32.mrb[0].mxu0 }
  0xdd   :  { %v147_v15 = vadd.f32 %v184_v14, %v138_v12  ;;  %v91_v16 = vpop.f32.mrb[1].mxu0 }
  0xde   :  { %v145_v18 = vadd.f32 %v128_v13, %v91_v16  ;;  %v185_v19 = vpop.f32.mrb[2].mxu0 }
  0xdf   :  { %v151_v21 = vmax.f32 %v147_v15, 0.0  ;;  %v148_v22 = vadd.f32 %v185_v19, %v143_v17  ;;  %v94_v23 = vpop.f32.mrb[3].mxu0 }
  0xe0   :  { %v149_v24 = vmax.f32 %v145_v18, 0.0  ;;  %v146_v25 = vadd.f32 %v133_v20, %v94_v23 }
  0xe1   :  { %155 = vst [vmem:[#allocation3 + $0x10] sm:$0xff] %v151_v21  ;;  %v152_v26 = vmax.f32 %v148_v22, 0.0 }
  0xe2   :  { %153 = vst [vmem:[#allocation3] sm:$0xff] %v149_v24  ;;  %v150_v27 = vmax.f32 %v146_v25, 0.0 }
  0xe3   :  { %156 = vst [vmem:[#allocation3 + $0x18] sm:$0xff] %v152_v26 }
  0xe4   :  { %154 = vst [vmem:[#allocation3 + $0x8] sm:$0xff] %v150_v27 }
  0xe5   :  { %206 = shalt.err (!%p203_p4)
}
  0xe6   :  { %s207_s28 = scalar_lea.hbm %s282_s3, 512 }
  0xe7   :  { %p208_p5 = scmp.ne.s32.totalorder %s282_s3, %s207_s28  ;;  %p211_p6 = scmp.lt.u32.totalorder %s207_s28, %s282_s3 }
  0xe9   :  { %p213_p7 = pnand %p211_p6, %p208_p5 }
  0xeb   :  { %216 = shalt.err (!%p213_p7)
}
  0xec   :  { %s222_s6 = smov 128   ;;  %s223_s7 = smov 8  }
  0xed   :  { %168 = dma.vmem_to_hbm [thread:$0]  %s163_s25, 512, %s282_s3, [#allocation4], %s222_s6, %s222_s6, %s223_s7  }
  0xee   :  { %217 = dma.done.wait [#allocation4], 512  }
  0xef   :  { %218 = vsyncadd [#allocation4], 4294966784 }
  0xf0   :  { %172 = vsyncpa [#allocation4], 1 }

</bundles_post_ra>
